<compile_context>
chip_gen: v6e
topology: v6e:2x2x1
jax: 0.10.0
libtpu: 0.0.40
codegen_flags: <defaults>
</compile_context>

<pallas_src>
import functools

import jax
import jax.numpy as jnp
from jax.experimental import pallas as pl
from jax.experimental.pallas import tpu as pltpu


def _round_up(x, m):
    return -(-x // m) * m


def _multi_nfm_kernel(idx_ref, table_ref, w1_ref, b1_ref, w2_ref, b2_ref,
                      w3_ref, wl_ref, bf_ref, out_ref):
    idx = idx_ref[...]                         # (TB, F) int32
    TB, F = idx.shape
    V = table_ref.shape[0]

    # ---- count[b, v] = #{f : idx[b, f] == v}, V on the 128-wide lane axis ----
    # Accumulate in int32; cast to f32 once after the loop.
    vio = jax.lax.broadcasted_iota(jnp.int32, (TB, V), 1)       # (TB, V)
    cnt = jnp.zeros((TB, V), jnp.int32)
    if F <= 16:
        # small static field count: fully unrolled
        for f in range(F):
            cnt = cnt + (vio == idx[:, f:f + 1]).astype(jnp.int32)
    else:
        # large F: fori_loop keeps vreg live ranges (and spills) flat
        def body(f, c):
            col = jax.lax.dynamic_slice_in_dim(idx, f, 1, axis=1)
            return c + (vio == col).astype(jnp.int32)
        cnt = jax.lax.fori_loop(0, F, body, cnt)
    count = cnt.astype(jnp.float32)                              # (TB, V)

    # ---- sum / sum-of-squares: two clean (TB, E) MXU dots, no lane split ----
    table = table_ref[...]                                       # (V, E)
    sum_e = jnp.dot(count, table, preferred_element_type=jnp.float32)
    sum_sq = jnp.dot(count, table * table, preferred_element_type=jnp.float32)

    # ---- bi-interaction pooling ----
    bi = 0.5 * (sum_e * sum_e - sum_sq)                          # (TB, E)

    # ---- MLP: Linear -> ReLU -> Linear -> Dropout(p=0) -> ReLU ----
    h = jnp.maximum(
        jnp.dot(bi, w1_ref[...], preferred_element_type=jnp.float32) + b1_ref[...],
        0.0)
    h = jnp.maximum(
        jnp.dot(h, w2_ref[...], preferred_element_type=jnp.float32) + b2_ref[...],
        0.0)

    # ---- head: h @ w3 + binarized(features) @ wl + (b3 + bl) — no concat ----
    feat_f = idx.astype(jnp.float32)
    feat_bin = jnp.where(feat_f > 0.0, jnp.float32(1.0), feat_f)   # (TB, F)
    out_ref[...] = (jnp.dot(h, w3_ref[...], preferred_element_type=jnp.float32)
                    + jnp.dot(feat_bin, wl_ref[...],
                              preferred_element_type=jnp.float32)
                    + bf_ref[...])


@functools.partial(jax.jit, static_argnames=("block_b",))
def multi_nfm_forward(feature_idx, params, *, block_b=512):
    B, F = feature_idx.shape
    table = params["embed"]                     # (V, E)
    V, E = table.shape
    H = params["w1"].shape[1]
    O = params["w3"].shape[1]

    # Precompute the fused head bias once in the wrapper (single tiny add).
    b_final = params["b3"] + params["bl"]                                # (1, O)

    # Batch tiling:
    #   * TB is always a multiple of 8 sublanes (valid (8,128) block).
    #   * TB is large (default up to 512) to amortize the ~600-cycle per-step
    #     pipeline overhead, but capped at ~ceil(B/4) so the grid keeps >= 4
    #     steps when B allows (feeds both v7x TensorCores, keeps the idx/out
    #     pipeline overlapped).
    tb_cap = _round_up(min(block_b, max(B, 8)), 8)
    tb_fair = _round_up(-(-B // 4), 8)
    TB = max(8, min(tb_cap, tb_fair))
    B_pad = _round_up(B, TB)
    idx_p = jnp.pad(feature_idx, ((0, B_pad - B), (0, 0)))               # pad rows = idx 0
    grid = (B_pad // TB,)

    resident = lambda i: (0, 0)   # weights / table: same block every step -> VMEM-resident
    in_specs = [
        pl.BlockSpec((TB, F), lambda i: (i, 0)),        # idx tile, pipelined
        pl.BlockSpec((V, E), resident),                 # embedding table
        pl.BlockSpec((E, H), resident),                 # w1
        pl.BlockSpec((1, H), resident),                 # b1
        pl.BlockSpec((H, H), resident),                 # w2
        pl.BlockSpec((1, H), resident),                 # b2
        pl.BlockSpec((H, O), resident),                 # w3
        pl.BlockSpec((F, O), resident),                 # wl
        pl.BlockSpec((1, O), resident),                 # b3 + bl
    ]
    # Output is (TB, O) directly: no 128-lane padding, so no O_pad/O write
    # amplification and no post-kernel lane slice.  The block spans the full
    # last dim, so each tile's HBM writeback is contiguous.
    out_spec = pl.BlockSpec((TB, O), lambda i: (i, 0))

    out = pl.pallas_call(
        _multi_nfm_kernel,
        out_shape=jax.ShapeDtypeStruct((B_pad, O), jnp.float32),
        grid=grid,
        in_specs=in_specs,
        out_specs=out_spec,
        compiler_params=pltpu.CompilerParams(
            dimension_semantics=("parallel",),
            vmem_limit_bytes=32 * 1024 * 1024,
        ),
    )(idx_p, table, params["w1"], params["b1"], params["w2"], params["b2"],
      params["w3"], params["wl"], b_final)

    return out[:B]


def init_params(key, num_feature, output_dim, hidden_dim, embed_dim, padding_idx):
    V = num_feature + 1
    ks = jax.random.split(key, 5)
    # nn.init.normal_(embed.weight, mean=0, std=0.1) — overwrites the zeroed
    # padding row in the PyTorch module, so we do NOT re-zero it either.
    embed = 0.1 * jax.random.normal(ks[0], (V, embed_dim), jnp.float32)

    def linear(k, fan_in, fan_out):
        kw, kb = jax.random.split(k)
        bound = 1.0 / (fan_in ** 0.5)
        w = jax.random.uniform(kw, (fan_in, fan_out), jnp.float32, -bound, bound)
        b = jax.random.uniform(kb, (1, fan_out), jnp.float32, -bound, bound)
        return w, b

    w1, b1 = linear(ks[1], embed_dim, hidden_dim)
    w2, b2 = linear(ks[2], hidden_dim, hidden_dim)
    w3, b3 = linear(ks[3], hidden_dim, output_dim)
    wl, bl = linear(ks[4], num_feature, output_dim)
    return dict(embed=embed, w1=w1, b1=b1, w2=w2, b2=b2, w3=w3, b3=b3,
                wl=wl, bl=bl)


def reference_forward(feature_idx, p):
    emb = p["embed"][feature_idx]                                  # (B, F, E)
    bi = 0.5 * (jnp.sum(emb, axis=1) ** 2 - jnp.sum(emb ** 2, axis=1))
    h = jnp.maximum(bi @ p["w1"] + p["b1"], 0.0)
    h = jnp.maximum(h @ p["w2"] + p["b2"], 0.0)
    mlp = h @ p["w3"] + p["b3"]
    f = feature_idx.astype(jnp.float32)
    fb = jnp.where(f > 0.0, 1.0, f)
    lin = fb @ p["wl"] + p["bl"]
    return lin + mlp


if __name__ == "__main__":
    # Small, forward-consistent shapes.  With the TB sizing logic the grid
    # still gets multiple steps (TB=8 -> grid=(2,)) even at this tiny batch.
    batch = 16
    num_feature = 8          # number of feature fields / linear input dim
    output_dim = 4
    hidden_dim = 32
    embed_dim = 16
    padding_idx = 0

    key = jax.random.PRNGKey(0)
    k_feat, k_param = jax.random.split(key)

    params = init_params(k_param, num_feature, output_dim, hidden_dim,
                         embed_dim, padding_idx)
    # Feature indices in [0, num_feature]; 0 is the padding index.
    feature = jax.random.randint(k_feat, (batch, num_feature), 0,
                                 num_feature + 1, dtype=jnp.int32)

    out = multi_nfm_forward(feature, params)      # default block_b=512
    out = jax.block_until_ready(out)

    ref = reference_forward(feature, params)
    assert out.shape == (batch, output_dim)
    assert jnp.allclose(out, ref, atol=1e-5, rtol=1e-5), (out, ref)

    print("KERNEL_OK")
</pallas_src>

<mosaic_0001>
module attributes {stable_mosaic.version = 11 : i64} {
  func.func @_multi_nfm_kernel(%arg0: i32, %arg1: memref<8x8xi32, #tpu.memory_space<vmem>>, %arg2: memref<9x16xf32, #tpu.memory_space<vmem>>, %arg3: memref<16x32xf32, #tpu.memory_space<vmem>>, %arg4: memref<1x32xf32, #tpu.memory_space<vmem>>, %arg5: memref<32x32xf32, #tpu.memory_space<vmem>>, %arg6: memref<1x32xf32, #tpu.memory_space<vmem>>, %arg7: memref<32x4xf32, #tpu.memory_space<vmem>>, %arg8: memref<8x4xf32, #tpu.memory_space<vmem>>, %arg9: memref<1x4xf32, #tpu.memory_space<vmem>>, %arg10: memref<8x4xf32, #tpu.memory_space<vmem>>) attributes {dimension_semantics = [#tpu.dimension_semantics<parallel>], iteration_bounds = array<i64: 2>, scalar_prefetch = 0 : i64, scratch_operands = 0 : i64, tpu.core_type = #tpu.core_type<tc>, window_params = [{transform_indices = @transform_0, window_bounds = array<i64: 8, 8>}, {pipeline_mode = #tpu.pipeline_mode<synchronous>, transform_indices = @transform_1, window_bounds = array<i64: 9, 16>}, {pipeline_mode = #tpu.pipeline_mode<synchronous>, transform_indices = @transform_2, window_bounds = array<i64: 16, 32>}, {pipeline_mode = #tpu.pipeline_mode<synchronous>, transform_indices = @transform_3, window_bounds = array<i64: 1, 32>}, {pipeline_mode = #tpu.pipeline_mode<synchronous>, transform_indices = @transform_4, window_bounds = array<i64: 32, 32>}, {pipeline_mode = #tpu.pipeline_mode<synchronous>, transform_indices = @transform_5, window_bounds = array<i64: 1, 32>}, {pipeline_mode = #tpu.pipeline_mode<synchronous>, transform_indices = @transform_6, window_bounds = array<i64: 32, 4>}, {pipeline_mode = #tpu.pipeline_mode<synchronous>, transform_indices = @transform_7, window_bounds = array<i64: 8, 4>}, {pipeline_mode = #tpu.pipeline_mode<synchronous>, transform_indices = @transform_8, window_bounds = array<i64: 1, 4>}, {transform_indices = @transform_9, window_bounds = array<i64: 8, 4>}]} {
    %c0 = arith.constant 0 : index
    %c0_0 = arith.constant 0 : index
    %0 = vector.load %arg1[%c0, %c0_0] : memref<8x8xi32, #tpu.memory_space<vmem>>, vector<8x8xi32>
    %1 = tpu.iota {dimensions = array<i32: 1>} : vector<8x9xi32>
    %c0_i32 = arith.constant 0 : i32
    %2 = vector.broadcast %c0_i32 : i32 to vector<8x9xi32>
    %3 = vector.extract_strided_slice %0 {offsets = [0, 0], sizes = [8, 1], strides = [1, 1]} : vector<8x8xi32> to vector<8x1xi32>
    %4 = vector.broadcast %3 : vector<8x1xi32> to vector<8x9xi32>
    %5 = arith.cmpi eq, %1, %4 : vector<8x9xi32>
    %6 = arith.extui %5 : vector<8x9xi1> to vector<8x9xi32>
    %7 = arith.addi %2, %6 : vector<8x9xi32>
    %8 = vector.extract_strided_slice %0 {offsets = [0, 1], sizes = [8, 1], strides = [1, 1]} : vector<8x8xi32> to vector<8x1xi32>
    %9 = vector.broadcast %8 : vector<8x1xi32> to vector<8x9xi32>
    %10 = arith.cmpi eq, %1, %9 : vector<8x9xi32>
    %11 = arith.extui %10 : vector<8x9xi1> to vector<8x9xi32>
    %12 = arith.addi %7, %11 : vector<8x9xi32>
    %13 = vector.extract_strided_slice %0 {offsets = [0, 2], sizes = [8, 1], strides = [1, 1]} : vector<8x8xi32> to vector<8x1xi32>
    %14 = vector.broadcast %13 : vector<8x1xi32> to vector<8x9xi32>
    %15 = arith.cmpi eq, %1, %14 : vector<8x9xi32>
    %16 = arith.extui %15 : vector<8x9xi1> to vector<8x9xi32>
    %17 = arith.addi %12, %16 : vector<8x9xi32>
    %18 = vector.extract_strided_slice %0 {offsets = [0, 3], sizes = [8, 1], strides = [1, 1]} : vector<8x8xi32> to vector<8x1xi32>
    %19 = vector.broadcast %18 : vector<8x1xi32> to vector<8x9xi32>
    %20 = arith.cmpi eq, %1, %19 : vector<8x9xi32>
    %21 = arith.extui %20 : vector<8x9xi1> to vector<8x9xi32>
    %22 = arith.addi %17, %21 : vector<8x9xi32>
    %23 = vector.extract_strided_slice %0 {offsets = [0, 4], sizes = [8, 1], strides = [1, 1]} : vector<8x8xi32> to vector<8x1xi32>
    %24 = vector.broadcast %23 : vector<8x1xi32> to vector<8x9xi32>
    %25 = arith.cmpi eq, %1, %24 : vector<8x9xi32>
    %26 = arith.extui %25 : vector<8x9xi1> to vector<8x9xi32>
    %27 = arith.addi %22, %26 : vector<8x9xi32>
    %28 = vector.extract_strided_slice %0 {offsets = [0, 5], sizes = [8, 1], strides = [1, 1]} : vector<8x8xi32> to vector<8x1xi32>
    %29 = vector.broadcast %28 : vector<8x1xi32> to vector<8x9xi32>
    %30 = arith.cmpi eq, %1, %29 : vector<8x9xi32>
    %31 = arith.extui %30 : vector<8x9xi1> to vector<8x9xi32>
    %32 = arith.addi %27, %31 : vector<8x9xi32>
    %33 = vector.extract_strided_slice %0 {offsets = [0, 6], sizes = [8, 1], strides = [1, 1]} : vector<8x8xi32> to vector<8x1xi32>
    %34 = vector.broadcast %33 : vector<8x1xi32> to vector<8x9xi32>
    %35 = arith.cmpi eq, %1, %34 : vector<8x9xi32>
    %36 = arith.extui %35 : vector<8x9xi1> to vector<8x9xi32>
    %37 = arith.addi %32, %36 : vector<8x9xi32>
    %38 = vector.extract_strided_slice %0 {offsets = [0, 7], sizes = [8, 1], strides = [1, 1]} : vector<8x8xi32> to vector<8x1xi32>
    %39 = vector.broadcast %38 : vector<8x1xi32> to vector<8x9xi32>
    %40 = arith.cmpi eq, %1, %39 : vector<8x9xi32>
    %41 = arith.extui %40 : vector<8x9xi1> to vector<8x9xi32>
    %42 = arith.addi %37, %41 : vector<8x9xi32>
    %43 = arith.sitofp %42 : vector<8x9xi32> to vector<8x9xf32>
    %c0_1 = arith.constant 0 : index
    %c0_2 = arith.constant 0 : index
    %44 = vector.load %arg2[%c0_1, %c0_2] : memref<9x16xf32, #tpu.memory_space<vmem>>, vector<9x16xf32>
    %cst = arith.constant dense<0.000000e+00> : vector<8x16xf32>
    %45 = tpu.matmul %43, %44, %cst {dimension_numbers = #tpu.dot_dimension_numbers<[1], [0], [0], [1], [0, 0, 1, 1], [], []>} : vector<8x9xf32>, vector<9x16xf32>, vector<8x16xf32> -> vector<8x16xf32>
    %46 = arith.mulf %44, %44 : vector<9x16xf32>
    %cst_3 = arith.constant dense<0.000000e+00> : vector<8x16xf32>
    %47 = tpu.matmul %43, %46, %cst_3 {dimension_numbers = #tpu.dot_dimension_numbers<[1], [0], [0], [1], [0, 0, 1, 1], [], []>} : vector<8x9xf32>, vector<9x16xf32>, vector<8x16xf32> -> vector<8x16xf32>
    %48 = arith.mulf %45, %45 : vector<8x16xf32>
    %49 = arith.subf %48, %47 : vector<8x16xf32>
    %cst_4 = arith.constant 5.000000e-01 : f32
    %50 = vector.broadcast %cst_4 : f32 to vector<8x16xf32>
    %51 = arith.mulf %50, %49 : vector<8x16xf32>
    %c0_5 = arith.constant 0 : index
    %c0_6 = arith.constant 0 : index
    %52 = vector.load %arg3[%c0_5, %c0_6] : memref<16x32xf32, #tpu.memory_space<vmem>>, vector<16x32xf32>
    %cst_7 = arith.constant dense<0.000000e+00> : vector<8x32xf32>
    %53 = tpu.matmul %51, %52, %cst_7 {dimension_numbers = #tpu.dot_dimension_numbers<[1], [0], [0], [1], [0, 0, 1, 1], [], []>} : vector<8x16xf32>, vector<16x32xf32>, vector<8x32xf32> -> vector<8x32xf32>
    %c0_8 = arith.constant 0 : index
    %c0_9 = arith.constant 0 : index
    %54 = vector.load %arg4[%c0_8, %c0_9] : memref<1x32xf32, #tpu.memory_space<vmem>>, vector<1x32xf32>
    %55 = vector.broadcast %54 : vector<1x32xf32> to vector<8x32xf32>
    %56 = arith.addf %53, %55 : vector<8x32xf32>
    %cst_10 = arith.constant 0.000000e+00 : f32
    %57 = vector.broadcast %cst_10 : f32 to vector<8x32xf32>
    %58 = arith.maximumf %56, %57 : vector<8x32xf32>
    %c0_11 = arith.constant 0 : index
    %c0_12 = arith.constant 0 : index
    %59 = vector.load %arg5[%c0_11, %c0_12] : memref<32x32xf32, #tpu.memory_space<vmem>>, vector<32x32xf32>
    %cst_13 = arith.constant dense<0.000000e+00> : vector<8x32xf32>
    %60 = tpu.matmul %58, %59, %cst_13 {dimension_numbers = #tpu.dot_dimension_numbers<[1], [0], [0], [1], [0, 0, 1, 1], [], []>} : vector<8x32xf32>, vector<32x32xf32>, vector<8x32xf32> -> vector<8x32xf32>
    %c0_14 = arith.constant 0 : index
    %c0_15 = arith.constant 0 : index
    %61 = vector.load %arg6[%c0_14, %c0_15] : memref<1x32xf32, #tpu.memory_space<vmem>>, vector<1x32xf32>
    %62 = vector.broadcast %61 : vector<1x32xf32> to vector<8x32xf32>
    %63 = arith.addf %60, %62 : vector<8x32xf32>
    %cst_16 = arith.constant 0.000000e+00 : f32
    %64 = vector.broadcast %cst_16 : f32 to vector<8x32xf32>
    %65 = arith.maximumf %63, %64 : vector<8x32xf32>
    %66 = arith.sitofp %0 : vector<8x8xi32> to vector<8x8xf32>
    %cst_17 = arith.constant 0.000000e+00 : f32
    %67 = vector.broadcast %cst_17 : f32 to vector<8x8xf32>
    %68 = arith.cmpf ogt, %66, %67 : vector<8x8xf32>
    %cst_18 = arith.constant 1.000000e+00 : f32
    %69 = vector.broadcast %cst_18 : f32 to vector<8x8xf32>
    %70 = arith.select %68, %69, %66 : vector<8x8xi1>, vector<8x8xf32>
    %c0_19 = arith.constant 0 : index
    %c0_20 = arith.constant 0 : index
    %71 = vector.load %arg7[%c0_19, %c0_20] : memref<32x4xf32, #tpu.memory_space<vmem>>, vector<32x4xf32>
    %cst_21 = arith.constant dense<0.000000e+00> : vector<8x4xf32>
    %72 = tpu.matmul %65, %71, %cst_21 {dimension_numbers = #tpu.dot_dimension_numbers<[1], [0], [0], [1], [0, 0, 1, 1], [], []>} : vector<8x32xf32>, vector<32x4xf32>, vector<8x4xf32> -> vector<8x4xf32>
    %c0_22 = arith.constant 0 : index
    %c0_23 = arith.constant 0 : index
    %73 = vector.load %arg8[%c0_22, %c0_23] : memref<8x4xf32, #tpu.memory_space<vmem>>, vector<8x4xf32>
    %cst_24 = arith.constant dense<0.000000e+00> : vector<8x4xf32>
    %74 = tpu.matmul %70, %73, %cst_24 {dimension_numbers = #tpu.dot_dimension_numbers<[1], [0], [0], [1], [0, 0, 1, 1], [], []>} : vector<8x8xf32>, vector<8x4xf32>, vector<8x4xf32> -> vector<8x4xf32>
    %75 = arith.addf %72, %74 : vector<8x4xf32>
    %c0_25 = arith.constant 0 : index
    %c0_26 = arith.constant 0 : index
    %76 = vector.load %arg9[%c0_25, %c0_26] : memref<1x4xf32, #tpu.memory_space<vmem>>, vector<1x4xf32>
    %77 = vector.broadcast %76 : vector<1x4xf32> to vector<8x4xf32>
    %78 = arith.addf %75, %77 : vector<8x4xf32>
    %c0_27 = arith.constant 0 : index
    %c0_28 = arith.constant 0 : index
    %79 = vector.load %arg10[%c0_27, %c0_28] : memref<8x4xf32, #tpu.memory_space<vmem>>, vector<8x4xf32>
    tpu.vector_store %arg10[%c0_27, %c0_28], %78 {strides = array<i32>} : memref<8x4xf32, #tpu.memory_space<vmem>>, vector<8x4xf32>,
    return
  }
  func.func @transform_0(%arg0: i32) -> (i32, i32) {
    %c0_i32 = arith.constant 0 : i32
    %c0_i32_0 = arith.constant 0 : i32
    return %arg0, %c0_i32 : i32, i32
  }
  func.func @transform_1(%arg0: i32) -> (i32, i32) {
    %c0_i32 = arith.constant 0 : i32
    %c0_i32_0 = arith.constant 0 : i32
    %c0_i32_1 = arith.constant 0 : i32
    return %c0_i32, %c0_i32_0 : i32, i32
  }
  func.func @transform_2(%arg0: i32) -> (i32, i32) {
    %c0_i32 = arith.constant 0 : i32
    %c0_i32_0 = arith.constant 0 : i32
    %c0_i32_1 = arith.constant 0 : i32
    return %c0_i32, %c0_i32_0 : i32, i32
  }
  func.func @transform_3(%arg0: i32) -> (i32, i32) {
    %c0_i32 = arith.constant 0 : i32
    %c0_i32_0 = arith.constant 0 : i32
    %c0_i32_1 = arith.constant 0 : i32
    return %c0_i32, %c0_i32_0 : i32, i32
  }
  func.func @transform_4(%arg0: i32) -> (i32, i32) {
    %c0_i32 = arith.constant 0 : i32
    %c0_i32_0 = arith.constant 0 : i32
    %c0_i32_1 = arith.constant 0 : i32
    return %c0_i32, %c0_i32_0 : i32, i32
  }
  func.func @transform_5(%arg0: i32) -> (i32, i32) {
    %c0_i32 = arith.constant 0 : i32
    %c0_i32_0 = arith.constant 0 : i32
    %c0_i32_1 = arith.constant 0 : i32
    return %c0_i32, %c0_i32_0 : i32, i32
  }
  func.func @transform_6(%arg0: i32) -> (i32, i32) {
    %c0_i32 = arith.constant 0 : i32
    %c0_i32_0 = arith.constant 0 : i32
    %c0_i32_1 = arith.constant 0 : i32
    return %c0_i32, %c0_i32_0 : i32, i32
  }
  func.func @transform_7(%arg0: i32) -> (i32, i32) {
    %c0_i32 = arith.constant 0 : i32
    %c0_i32_0 = arith.constant 0 : i32
    %c0_i32_1 = arith.constant 0 : i32
    return %c0_i32, %c0_i32_0 : i32, i32
  }
  func.func @transform_8(%arg0: i32) -> (i32, i32) {
    %c0_i32 = arith.constant 0 : i32
    %c0_i32_0 = arith.constant 0 : i32
    %c0_i32_1 = arith.constant 0 : i32
    return %c0_i32, %c0_i32_0 : i32, i32
  }
  func.func @transform_9(%arg0: i32) -> (i32, i32) {
    %c0_i32 = arith.constant 0 : i32
    %c0_i32_0 = arith.constant 0 : i32
    return %arg0, %c0_i32 : i32, i32
  }
}

</mosaic_0001>

<bundles_post_ra>
// kernel: multi_nfm_forward.1
= control target key start
LH: loop header
LB: loop body
LE: loop exit
PB: predicated region body
PF: predicated region fallthrough
CT: control target
= control target key end

     0   :  { %14 = vsyncpa [#allocation3], 0  ;;  %s1406_s0 = inlined_call_operand.vmem [shape: s32[16,8], index: 0, kind: input, shape index: {}]   ;;  %s1407_s1 = inlined_call_operand.vmem [shape: f32[9,16], index: 1, kind: input, shape index: {}]   ;;  %s1408_s2 = inlined_call_operand.vmem [shape: f32[16,32], index: 2, kind: input, shape index: {}]   ;;  %s1409_s3 = inlined_call_operand.hbm [shape: f32[1,32], index: 3, kind: input, shape index: {}]   ;;  %s1410_s4 = inlined_call_operand.vmem [shape: f32[32,32], index: 4, kind: input, shape index: {}]   ;;  %s1411_s5 = inlined_call_operand.hbm [shape: f32[1,32], index: 5, kind: input, shape index: {}]   ;;  %s1412_s6 = inlined_call_operand.vmem [shape: f32[32,4], index: 6, kind: input, shape index: {}]   ;;  %s1413_s7 = inlined_call_operand.vmem [shape: f32[8,4], index: 7, kind: input, shape index: {}]   ;;  %s1414_s8 = inlined_call_operand.vmem [shape: f32[1,4], index: 8, kind: input, shape index: {}]   ;;  %s1415_s9 = inlined_call_operand.vmem [shape: f32[16,4], index: 9, kind: output, shape index: {}]  }
   0x1   :  { %15 = vsyncpa [#allocation5], 0  ;;  %s1244_s30 = smov 0  }
   0x2 LB: > { %s1250_s10 = sadd.s32 4294967295, %s1180_s30   ;;  %p975_p0 = scmp.ge.s32.totalorder %s1180_s30, 1  ;;  %s1180_s30 = sphi %s1244_s30, %s21_s30  }
   0x3   : > { %p246_p1 = scmp.lt.s32.totalorder %s1180_s30, 3  ;;  %p1416_p2 = scmp.eq.s32.totalorder %s1250_s10, 0 }
   0x4   : > { %s1182_s12 = smov [#allocation2]   ;;  %s1183_s14 = smov [#allocation4]  }
   0x5   : > { %p1255_p3 = pnand %p975_p0, %p246_p1  ;;  %s265_s13 = sshll.u32 %s1182_s12, 4  ;;  %s266_s13 = int_to_ptr.vmem [resolvable:$true] %s265_s13 }
   0x6   : > { %s279_s15 = sshll.u32 %s1183_s14, 4  ;;  %s1125_s17 = scalar_lea.vmem %s266_s13, 16  ;;  %s280_s15 = int_to_ptr.vmem [resolvable:$true] %s279_s15 }
   0x7   : > { %p1074_p4 = pneg %p1255_p3  ;;  %p1126_p7 = scmp.ne.s32.totalorder %s266_s13, %s1125_s17 }
   0x8   : > { %s1132_s18 = scalar_lea.vmem %s266_s13, 32  ;;  %p1133_p10 = scmp.lt.s32.totalorder %s266_s13, %s266_s13 }
   0x9   : > { %p1263_p5 = pnand %p1416_p2, %p1074_p4  ;;  %p1134_p11 = scmp.lt.s32.totalorder %s1132_s18, %s1125_s17 }
   0xb   : > { %p1116_p6 = pneg %p1263_p5  ;;  %p1135_p12 = por %p1134_p11, %p1133_p10 }
   0xd   : > { %p1128_p8 = pnand %p1126_p7, %p1116_p6 }
   0xf   : > { %p1129_p9 = pneg %p1128_p8 }
  0x11   : > { %p1136_p13 = pnand %p1135_p12, %p1129_p9 }
  0x13   : > { %1139 = shalt.err (!%p1136_p13)
}
  0x14   : > { %1077 = dma.hbm_to_vmem [thread:$0]  (!%p1263_p5), %s1409_s3, 16, %s266_s13, [#allocation3]  }
  0x15   : > { %s1151_s21 = scalar_lea.vmem %s280_s15, 16  ;;  %s1158_s22 = scalar_lea.vmem %s280_s15, 32 }
  0x16   : > { %p1152_p0 = scmp.ne.s32.totalorder %s280_s15, %s1151_s21  ;;  %p1159_p7 = scmp.lt.s32.totalorder %s280_s15, %s280_s15 }
  0x17   : > { %p1160_p8 = scmp.lt.s32.totalorder %s1158_s22, %s1151_s21 }
  0x18   : > { %p1154_p1 = pnand %p1152_p0, %p1116_p6 }
  0x19   : > { %p1161_p2 = por %p1160_p8, %p1159_p7 }
  0x1a   : > { %p1155_p4 = pneg %p1154_p1 }
  0x1c   : > { %p1162_p10 = pnand %p1161_p2, %p1155_p4 }
  0x1e   : > { %1165 = shalt.err (!%p1162_p10)
}
  0x1f   : > { %1080 = dma.hbm_to_vmem [thread:$0]  (!%p1263_p5), %s1411_s5, 16, %s280_s15, [#allocation5]  }
  0x20   : > { %308 = sbr.rel (%p1255_p3) target bundleno = 991 (0x3df), region = 56  ;;  %p1419_p9 = scmp.eq.s32.totalorder (!%p1255_p3), %s1250_s10, 0 }
  0x25   : > { %1171 = dma.done.wait (%p1419_p9), [#allocation3], 16   ;;  %p1420_p6 = pmov %p1419_p9 }
  0x27   : > { %1173 = vsyncadd (%p1420_p6), [#allocation3], 4294967280  ;;  %p1421_p11 = pmov %p1420_p6 }
  0x28   : > { %p1422_p2 = pmov %p1420_p6 }
  0x29   : > { %1175 = dma.done.wait (%p1421_p11), [#allocation5], 16  }
  0x2a   : > { %1177 = vsyncadd (%p1422_p2), [#allocation5], 4294967280  ;;  %p346_p12 = scmp.lt.s32.totalorder %s1250_s10, 1  ;;  %v1184_v0 = vmov 2   ;;  %v1185_v1 = vmov 0   ;;  %v1186_v3 = vmov 3   ;;  %v355_v12 = vlaneseq }
  0x2b   : > { %1107 = vset.pattern.permute.xlu1 %v1184_v0  ;;  %1105 = vset.pattern.permute.xlu0 %v1185_v1  ;;  %v1187_v4 = vmov 1   ;;  %v1188_v5 = vmov 4   ;;  %v1189_v6 = vmov 5   ;;  %v1190_v7 = vmov 6   ;;  %v406_v10 = vld [vmem:[%s1407_s1 + $0x8] sm:$0x1] }
  0x2c   : > { %s1424_s10 = smov (!%p346_p12, %s1250_s10), 1  ;;  %v1191_v8 = vmov 7   ;;  %v1192_v9 = vmov 0.0   ;;  %vm411_vm0 = vcmask 1040384   ;;  %v405_v11 = vld [vmem:[%s1407_s1] sm:$0xff]  ;;  %vm1193_vm1 = vmmov 0  }
  0x2d   : > { %s982_s25 = sshll.u32 %s1424_s10, 3  ;;  %1018 = vmatprep.subr.mxu1 %v1192_v9  ;;  %1032 = vmatprep.subr.mxu0 %v1192_v9  ;;  %v356_v15 = vand.u32 127, %v355_v12  ;;  %v486_v37 = vmul.f32 %v406_v10, %v406_v10  ;;  %vm407_vm10 = vcmask 72704   ;;  %v485_v39 = vmul.f32 %v405_v11, %v405_v11  ;;  %v564_v40 = vld [vmem:[%s1408_s2 + $0x8] sm:$0xff]  ;;  %v563_v41 = vld [vmem:[%s1408_s2] sm:$0xff]  ;;  %v650_v42 = vld [vmem:[%s1410_s4 + $0x18] sm:$0xff] }
  0x2e   : > { %s349_s28 = scalar_lea.vmem %s1406_s0, %s982_s25  ;;  %1019 = vmatpush3.msk.msra.mxu1 %vm411_vm0, %v406_v10  ;;  %1022 = vmatprep.mubr.msk.f32.mxu1 %vm1193_vm1, %v1192_v9  ;;  %vm572_vm11 = vcmask 130048   ;;  %v649_v50 = vld [vmem:[%s1410_s4 + $0x10] sm:$0xff]  ;;  %v648_v51 = vld [vmem:[%s1410_s4 + $0x8] sm:$0xff]  ;;  %v647_v52 = vld [vmem:[%s1410_s4] sm:$0xff]  ;;  %vm741_vm12 = vcmask 64512   ;;  %vm658_vm14 = vcmask 261120   ;;  %s353_s22 = scalar_lea.vmem %s1415_s9, %s982_s25 }
  0x2f   : > { %v1306_v2 = vld [vmem:[%s349_s28] sm:$0xff]  ;;  %1020 = vmatprep.subr.mxu1 %v1192_v9  ;;  %1036 = vmatprep.mubr.msk.f32.mxu0 %vm1193_vm1, %v1192_v9  ;;  %v739_v55 = vld [vmem:[%s1412_s6 + $0x18] sm:$0xff]  ;;  %v738_v62 = vld [vmem:[%s1412_s6 + $0x10] sm:$0xff]  ;;  %vm896_vm15 = vcmask 31744  }
  0x30   : > { %369 = vperm.xlu1 %1107, %v1306_v2   ;;  %358 = vperm.xlu0 %1105, %v1306_v2   ;;  %v740_v53 = vld [vmem:[%s1413_s7] sm:$0xff]  ;;  %v733_v54 = vcvt.s32.f32 %v1306_v2  ;;  %v737_v63 = vld [vmem:[%s1412_s6 + $0x8] sm:$0xff] }
  0x31   : > { %1021 = vmatpush3.msra.mxu1 %v405_v11  ;;  %1033 = vmatpush3.msra.mxu0 %v564_v40  ;;  %v988_v57 = vld [vmem:[#allocation2] ss:$0 sm:$0xff] }
  0x32   : > { %1025 = vmatprep.subr.mxu1 %v1192_v9  ;;  %1034 = vmatprep.subr.mxu0 %v1192_v9  ;;  %vm734_vm13 = vcmp.gt.f32.partialorder %v733_v54, 0.0  ;;  %v736_v0 = vld [vmem:[%s1412_s6] sm:$0xff] }
  0x33   : > { %1035 = vmatpush3.msra.mxu0 %v563_v41  ;;  %v735_v56 = vsel %vm734_vm13, 1.0, %v733_v54  ;;  %v994_v10 = vld [vmem:[%s1414_s8] ss:$0 sm:$0xff] }
  0x34   : > { %1108 = vset.pattern.permute.xlu1 %v1186_v3  ;;  %1106 = vset.pattern.permute.xlu0 %v1187_v4  ;;  %v990_v3 = vld [vmem:[#allocation4] ss:$0 sm:$0xff] }
  0x35   : > { %375 = vperm.xlu1 %1108, %v1306_v2   ;;  %363 = vperm.xlu0 %1106, %v1306_v2  }
  0x36   : > { %1050 = vmatprep.subr.mxu0 %v1192_v9 }
  0x39   : > { %1109 = vset.pattern.permute.xlu1 %v1188_v5  ;;  %1110 = vset.pattern.permute.xlu0 %v1189_v6 }
  0x3a   : > { %381 = vperm.xlu1 %1109, %v1306_v2   ;;  %387 = vperm.xlu0 %1110, %v1306_v2  }
  0x3e   : > { %1111 = vset.pattern.permute.xlu1 %v1190_v7  ;;  %1113 = vset.pattern.permute.xlu0 %v1191_v8 }
  0x3f   : > { %393 = vperm.xlu1 %1111, %v1306_v2  }
  0x43   : > { %1112 = vset.pattern.permute.xlu1 %v1191_v8 }
  0x44   : > { %399 = vperm.xlu1 %1112, %v1306_v2  }
  0xab   : > { %v370_v13 = vpop.permute.xlu1 %369  ;;  %v359_v14 = vpop.permute.xlu0 %358 }
  0xac   : > { %vm360_vm2 = vcmp.eq.s32.totalorder %v356_v15, %v359_v14  ;;  %vm371_vm3 = vcmp.eq.s32.totalorder %v356_v15, %v370_v13 }
  0xad   : > { %v361_v18 = vsel %vm360_vm2, 1, %v1185_v1  ;;  %v372_v21 = vsel %vm371_vm3, 1, %v1185_v1 }
  0xb0   : > { %v376_v16 = vpop.permute.xlu1 %375  ;;  %v364_v17 = vpop.permute.xlu0 %363 }
  0xb1   : > { %vm365_vm4 = vcmp.eq.s32.totalorder %v356_v15, %v364_v17  ;;  %vm377_vm5 = vcmp.eq.s32.totalorder %v356_v15, %v376_v16 }
  0xb2   : > { %v366_v19 = vsel %vm365_vm4, 1, %v1185_v1  ;;  %v378_v25 = vsel %vm377_vm5, 1, %v1185_v1 }
  0xb3   : > { %v367_v20 = vadd.s32 %v366_v19, %v361_v18 }
  0xb5   : > { %v373_v22 = vadd.s32 %v372_v21, %v367_v20  ;;  %v382_v23 = vpop.permute.xlu1 %381  ;;  %v388_v24 = vpop.permute.xlu0 %387 }
  0xb6   : > { %vm383_vm6 = vcmp.eq.s32.totalorder %v356_v15, %v382_v23  ;;  %vm389_vm7 = vcmp.eq.s32.totalorder %v356_v15, %v388_v24 }
  0xb7   : > { %v379_v26 = vadd.s32 %v378_v25, %v373_v22  ;;  %v384_v27 = vsel %vm383_vm6, 1, %v1185_v1  ;;  %v390_v29 = vsel %vm389_vm7, 1, %v1185_v1 }
  0xb9   : > { %v385_v28 = vadd.s32 %v384_v27, %v379_v26 }
  0xba   : > { %v394_v30 = vpop.permute.xlu1 %393 }
  0xbb   : > { %vm395_vm8 = vcmp.eq.s32.totalorder %v356_v15, %v394_v30  ;;  %v391_v31 = vadd.s32 %v390_v29, %v385_v28 }
  0xbc   : > { %v396_v32 = vsel %vm395_vm8, 1, %v1185_v1 }
  0xbd   : > { %v397_v34 = vadd.s32 %v396_v32, %v391_v31 }
  0xbf   : > { %v400_v33 = vpop.permute.xlu1 %399 }
  0xc0   : > { %vm401_vm9 = vcmp.eq.s32.totalorder %v356_v15, %v400_v33 }
  0xc1   : > { %v402_v35 = vsel %vm401_vm9, 1, %v1185_v1 }
  0xc2   : > { %v403_v36 = vadd.s32 %v402_v35, %v397_v34 }
  0xc4   : > { %v404_v38 = vcvt.s32.f32 %v403_v36 }
  0xc6   : > { %1023 = vmatmul.mubr.msk.f32.vlgmr.msra.gmra.mxu1 %vm407_vm10, %v404_v38 }
  0xc7   : > { %1026 = vmatpush3.msk.msra.mxu1 %vm411_vm0, %v486_v37  ;;  %1029 = vmatprep.mubr.msk.f32.mxu1 %vm1193_vm1, %v1192_v9 }
  0xc8   : > { %1027 = vmatprep.subr.mxu1 %v1192_v9 }
  0xc9   : > { %1028 = vmatpush3.msra.mxu1 %v485_v39 }
  0xca   : > { %1030 = vmatmul.mubr.msk.f32.vlgmr.msra.gmra.mxu1 %vm407_vm10, %v404_v38  ;;  %1039 = vmatprep.subr.mxu1 %v1192_v9 }
  0xcb   : > { %1047 = vmatprep.mubr.msk.f32.mxu1 %vm1193_vm1, %v1192_v9  ;;  %1040 = vmatpush3.msra.mxu1 %v650_v42 }
  0xcc   : > { %1041 = vmatprep.subr.mxu1 %v1192_v9 }
  0xcd   : > { %1042 = vmatpush3.msra.mxu1 %v649_v50 }
  0xce   : > { %1043 = vmatprep.subr.mxu1 %v1192_v9 }
  0xcf   : > { %1044 = vmatpush3.msra.mxu1 %v648_v51 }
  0xd0   : > { %1045 = vmatprep.subr.mxu1 %v1192_v9 }
  0xd1   : > { %1046 = vmatpush3.msra.mxu1 %v647_v52 }
 0x186   : > { %v481_v43 = vpop.f32.mrf.mxu1 }
 0x187   : > { %v560_v45 = vmul.f32 %v481_v43, %v481_v43 }
 0x188   : > { %v1024_v44 = vpop.f32.mrf.mxu1 }
 0x18a   : > { %v556_v46 = vpop.f32.mrf.mxu1 }
 0x18b   : > { %v561_v47 = vsub.f32 %v560_v45, %v556_v46 }
 0x18c   : > { %v1031_v48 = vpop.f32.mrf.mxu1 }
 0x18d   : > { %v562_v49 = vmul.f32 0.5, %v561_v47 }
 0x18f   : > { %1037 = vmatmul.mubr.msk.f32.vlgmr.msra.gmra.mxu0 %vm572_vm11, %v562_v49 }
 0x190   : > { %1052 = vmatprep.mubr.msk.f32.mxu0 %vm1193_vm1, %v1192_v9  ;;  %1051 = vmatpush3.msra.mxu0 %v740_v53 }
 0x191   : > { %1055 = vmatprep.subr.mxu0 %v1192_v9 }
 0x193   : > { %1053 = vmatmul.mubr.msk.f32.vlgmr.msra.gmra.mxu0 %vm741_vm12, %v735_v56 }
 0x194   : > { %1056 = vmatpush3.msra.mxu0 %v739_v55  ;;  %1063 = vmatprep.mubr.msk.f32.mxu0 %vm1193_vm1, %v1192_v9 }
 0x195   : > { %1057 = vmatprep.subr.mxu0 %v1192_v9 }
 0x196   : > { %1058 = vmatpush3.msra.mxu0 %v738_v62 }
 0x197   : > { %1059 = vmatprep.subr.mxu0 %v1192_v9 }
 0x198   : > { %1060 = vmatpush3.msra.mxu0 %v737_v63 }
 0x199   : > { %1061 = vmatprep.subr.mxu0 %v1192_v9 }
 0x19a   : > { %1062 = vmatpush3.msra.mxu0 %v736_v0 }
 0x24f   : > { %v642_v58 = vpop.f32.mrf.mxu0 }
 0x250   : > { %v643_v59 = vadd.f32 %v988_v57, %v642_v58 }
 0x251   : > { %v1038_v60 = vpop.f32.mrf.mxu0 }
 0x252   : > { %v646_v61 = vmax.f32 %v643_v59, 0.0 }
 0x253   : > { %v811_v1 = vpop.f32.mrf.mxu0 }
 0x254   : > { %1048 = vmatmul.mubr.msk.f32.vlgmr.msra.gmra.mxu1 %vm658_vm14, %v646_v61 }
 0x255   : > { %v1054_v2 = vpop.f32.mrf.mxu0 }
 0x314   : > { %v728_v4 = vpop.f32.mrf.mxu1 }
 0x315   : > { %v729_v5 = vadd.f32 %v990_v3, %v728_v4 }
 0x316   : > { %v1049_v6 = vpop.f32.mrf.mxu1 }
 0x317   : > { %v732_v7 = vmax.f32 %v729_v5, 0.0 }
 0x319   : > { %1064 = vmatmul.mubr.msk.f32.vlgmr.msra.gmra.mxu0 %vm658_vm14, %v732_v7 }
 0x3d9   : > { %v884_v8 = vpop.f32.mrf.mxu0 }
 0x3da   : > { %v885_v9 = vadd.f32 %v884_v8, %v811_v1 }
 0x3db   : > { %v1065_v11 = vpop.f32.mrf.mxu0 }
 0x3dc   : > { %v895_v12 = vadd.f32 %v994_v10, %v885_v9 }
 0x3de   : > { %897 = vst.msk [vmem:[%s353_s22] sm:$0xff] %vm896_vm15, %v895_v12 }
 0x3df PF: > { %s21_s30 = sadd.s32 1, %s1180_s30  }
 0x3e0   : > { %p18_p3 = scmp.ge.s32.totalorder %s21_s30, 4  }
 0x3e2   :  { %20 = sbr.rel (!%p18_p3) target bundleno = 2 (0x2), region = 95 }
 0x3e7   :  { %917 = vsyncpa [#allocation3], 1 }
 0x3e8   :  { %919 = vsyncpa [#allocation3 + $0x1], 1 }
 0x3e9   :  { %920 = vsyncpa [#allocation5], 1 }

</bundles_post_ra>
